<compile_context>
chip_gen: v6e
topology: v6e:2x2x1
jax: 0.10.0
libtpu: 0.0.40
codegen_flags: <defaults>
</compile_context>

<pallas_src>
from functools import partial

import numpy as np
import jax
import jax.numpy as jnp
from jax import lax
from jax.experimental import pallas as pl
from jax.experimental.pallas import tpu as pltpu

# ----------------------------------------------------------------------------
# Deterministic "parameters" (same values as the PyTorch module's __init__).
# ----------------------------------------------------------------------------
model_data = {'dna': [1.0, 1.0, 1.0], 'inntrengeren': [0.2, 0.2, 0.2]}
it2ind = {name: i for i, name in enumerate(model_data.keys())}
ind2it = {v: k for k, v in it2ind.items()}
vectors = np.array([x for x in model_data.values()], dtype=np.float32)   # (2, 3)

N_ITEMS, N_FACTORS = vectors.shape
NF_SUB = 8       # factor axis padded to a sublane multiple
NI_LANE = 128    # item axis padded to a lane multiple (lane-dense score width)
BQ = 8           # query rows per grid step (sublane multiple)

# Padded, transposed embedding table [factors, items], built ONCE and kept
# device-resident.  (For a static catalog one could precompute the full Gram
# matrix G = E @ E.T instead; kept as gather+matmul so the structure scales.)
_emb_t_host = np.zeros((NF_SUB, NI_LANE), dtype=np.float32)
_emb_t_host[:N_FACTORS, :N_ITEMS] = vectors.T
EMB_T = jnp.asarray(_emb_t_host)                                          # (8, 128)


# ----------------------------------------------------------------------------
# Pallas kernel (one batch tile of BQ queries):
#   onehot[b, i] = (i == idx[b])
#   U            = onehot @ emb_t.T          (MXU, gathers the query rows)
#   scores       = U @ emb_t                 (MXU, f32 accumulate)
#   padded item lanes are forced to -inf so a lane-dense top_k is safe.
# ----------------------------------------------------------------------------
def mlt_scores_kernel(idx_ref, emb_t_ref, out_ref):
    # idx_ref:   VMEM int32[BQ, 1]            query item indices (clamped on host side)
    # emb_t_ref: VMEM f32[NF_SUB, NI_LANE]    factors on sublanes, items on lanes
    # out_ref:   VMEM f32[BQ, NI_LANE]        lane-dense score rows
    emb_t = emb_t_ref[...]                                              # (8, 128)
    idx = idx_ref[...]                                                  # (BQ, 1)

    lane_ids = lax.broadcasted_iota(jnp.int32, (BQ, NI_LANE), 1)        # (BQ, 128)
    onehot = (lane_ids == idx).astype(jnp.float32)                      # VPU select

    # Gather the query embeddings: (BQ, NI_LANE) x (NF_SUB, NI_LANE) -> (BQ, NF_SUB)
    u = lax.dot_general(onehot, emb_t, (((1,), (1,)), ((), ())),
                        preferred_element_type=jnp.float32)
    # Score against every item:    (BQ, NF_SUB) x (NF_SUB, NI_LANE) -> (BQ, NI_LANE)
    scores = lax.dot_general(u, emb_t, (((1,), (0,)), ((), ())),
                             preferred_element_type=jnp.float32)

    # Mask padded item lanes so lane-dense top_k can never pick them.
    out_ref[...] = jnp.where(lane_ids >= N_ITEMS, -jnp.inf, scores)


def mlt_scores(emb_t: jax.Array, idx: jax.Array) -> jax.Array:
    """idx: int32[B_pad, 1] (B_pad a multiple of BQ) -> f32[B_pad, NI_LANE]."""
    b_pad = idx.shape[0]
    return pl.pallas_call(
        mlt_scores_kernel,
        out_shape=jax.ShapeDtypeStruct((b_pad, NI_LANE), jnp.float32),
        grid=(b_pad // BQ,),
        in_specs=[
            pl.BlockSpec((BQ, 1), lambda i: (i, 0)),                    # query indices
            pl.BlockSpec((NF_SUB, NI_LANE), lambda i: (0, 0)),          # table (replicated)
        ],
        out_specs=pl.BlockSpec((BQ, NI_LANE), lambda i: (i, 0)),
        compiler_params=pltpu.CompilerParams(
            dimension_semantics=("parallel",)),                         # v7x: shard batch over TCs
    )(idx, emb_t)


# Single cached executable: score kernel + batched top_k fused under one jit.
@partial(jax.jit, static_argnames=("size",))
def _query(emb_t: jax.Array, idx: jax.Array, size: int):
    idx = jnp.clip(idx, 0, N_ITEMS - 1)          # never address a padded/OOB item
    scores = mlt_scores(emb_t, idx)              # (B_pad, NI_LANE), pads = -inf
    s, i = lax.top_k(scores, size)               # lane-dense input, one pass for the batch
    return s, i


# ----------------------------------------------------------------------------
# Python wrappers reproducing MLTModel.forward (single + batched entry points).
# ----------------------------------------------------------------------------
def _pad_batch(indices):
    b = len(indices)
    b_pad = ((b + BQ - 1) // BQ) * BQ
    arr = np.zeros((b_pad, 1), dtype=np.int32)
    arr[:b, 0] = indices
    return jnp.asarray(arr), b


def mlt_forward_batch(item_names, size: int = 5):
    """Batched queries: one dispatch, one host sync for all of them."""
    if size > N_ITEMS:
        size = N_ITEMS
    # TODO(synk): string->index mapping and the Dict[str, float] response are
    # host-side glue with no Pallas equivalent (same as the TorchScript glue).
    idx, b = _pad_batch([it2ind[name] for name in item_names])
    s, i = jax.block_until_ready(_query(EMB_T, idx, size))
    s = np.asarray(s[:b]); i = np.asarray(i[:b])
    return [{ind2it[int(ii)]: float(ss) for ii, ss in zip(irow, srow)}
            for irow, srow in zip(i, s)]


def mlt_forward(item_name: str, size: int = 5):
    return mlt_forward_batch([item_name], size)[0]


if __name__ == "__main__":
    # deterministic example "input": pick a query item via PRNGKey(0)
    key = jax.random.PRNGKey(0)
    q_idx = int(jax.random.randint(key, (), 0, N_ITEMS))
    item_name = ind2it[q_idx]

    # batched path (every item in one dispatch) + single-query path
    batch_names = [ind2it[i] for i in range(N_ITEMS)]
    batch_resp = mlt_forward_batch(batch_names, size=5)
    single_resp = mlt_forward(item_name, size=5)

    # reference check against plain numpy (same math as the PyTorch forward)
    checks = list(zip(batch_names, batch_resp)) + [(item_name, single_resp)]
    for name, resp in checks:
        u_ref = vectors[it2ind[name]]
        scores_ref = vectors @ u_ref
        order = np.argsort(-scores_ref)
        expected = {ind2it[int(j)]: float(scores_ref[j]) for j in order}
        assert list(resp.keys()) == list(expected.keys()), (name, resp, expected)
        for k in resp:
            assert abs(resp[k] - expected[k]) < 1e-5, (name, resp, expected)

    print("KERNEL_OK")
</pallas_src>

<mosaic_0001>
module attributes {stable_mosaic.version = 11 : i64} {
  func.func @mlt_scores_kernel(%arg0: i32, %arg1: memref<8x1xi32, #tpu.memory_space<vmem>>, %arg2: memref<8x128xf32, #tpu.memory_space<vmem>>, %arg3: memref<8x128xf32, #tpu.memory_space<vmem>>) attributes {dimension_semantics = [#tpu.dimension_semantics<parallel>], iteration_bounds = array<i64: 1>, scalar_prefetch = 0 : i64, scratch_operands = 0 : i64, tpu.core_type = #tpu.core_type<tc>, window_params = [{transform_indices = @transform_0, window_bounds = array<i64: 8, 1>}, {pipeline_mode = #tpu.pipeline_mode<synchronous>, transform_indices = @transform_1, window_bounds = array<i64: 8, 128>}, {transform_indices = @transform_2, window_bounds = array<i64: 8, 128>}]} {
    %c0 = arith.constant 0 : index
    %c0_0 = arith.constant 0 : index
    %0 = vector.load %arg2[%c0, %c0_0] : memref<8x128xf32, #tpu.memory_space<vmem>>, vector<8x128xf32>
    %c0_1 = arith.constant 0 : index
    %c0_2 = arith.constant 0 : index
    %1 = vector.load %arg1[%c0_1, %c0_2] : memref<8x1xi32, #tpu.memory_space<vmem>>, vector<8x1xi32>
    %2 = tpu.iota {dimensions = array<i32: 1>} : vector<8x128xi32>
    %3 = vector.broadcast %1 : vector<8x1xi32> to vector<8x128xi32>
    %4 = arith.cmpi eq, %2, %3 : vector<8x128xi32>
    %5 = arith.extui %4 : vector<8x128xi1> to vector<8x128xi32>
    %6 = arith.sitofp %5 : vector<8x128xi32> to vector<8x128xf32>
    %cst = arith.constant dense<0.000000e+00> : vector<8x8xf32>
    %7 = tpu.matmul %6, %0, %cst {dimension_numbers = #tpu.dot_dimension_numbers<[1], [1], [0], [0], [0, 0, 1, 0], [], []>} : vector<8x128xf32>, vector<8x128xf32>, vector<8x8xf32> -> vector<8x8xf32>
    %cst_3 = arith.constant dense<0.000000e+00> : vector<8x128xf32>
    %8 = tpu.matmul %7, %0, %cst_3 {dimension_numbers = #tpu.dot_dimension_numbers<[1], [0], [0], [1], [0, 0, 1, 1], [], []>} : vector<8x8xf32>, vector<8x128xf32>, vector<8x128xf32> -> vector<8x128xf32>
    %c2_i32 = arith.constant 2 : i32
    %9 = vector.broadcast %c2_i32 : i32 to vector<8x128xi32>
    %10 = arith.cmpi sge, %2, %9 : vector<8x128xi32>
    %cst_4 = arith.constant 0xFF800000 : f32
    %11 = vector.broadcast %cst_4 : f32 to vector<8x128xf32>
    %12 = arith.select %10, %11, %8 : vector<8x128xi1>, vector<8x128xf32>
    %c0_5 = arith.constant 0 : index
    %c0_6 = arith.constant 0 : index
    %13 = vector.load %arg3[%c0_5, %c0_6] : memref<8x128xf32, #tpu.memory_space<vmem>>, vector<8x128xf32>
    tpu.vector_store %arg3[%c0_5, %c0_6], %12 {strides = array<i32>} : memref<8x128xf32, #tpu.memory_space<vmem>>, vector<8x128xf32>,
    return
  }
  func.func @transform_0(%arg0: i32) -> (i32, i32) {
    %c0_i32 = arith.constant 0 : i32
    %c0_i32_0 = arith.constant 0 : i32
    return %arg0, %c0_i32 : i32, i32
  }
  func.func @transform_1(%arg0: i32) -> (i32, i32) {
    %c0_i32 = arith.constant 0 : i32
    %c0_i32_0 = arith.constant 0 : i32
    %c0_i32_1 = arith.constant 0 : i32
    return %c0_i32, %c0_i32_0 : i32, i32
  }
  func.func @transform_2(%arg0: i32) -> (i32, i32) {
    %c0_i32 = arith.constant 0 : i32
    %c0_i32_0 = arith.constant 0 : i32
    return %arg0, %c0_i32 : i32, i32
  }
}

</mosaic_0001>

<bundles_post_ra>
// kernel: custom-call
= control target key start
LH: loop header
LB: loop body
LE: loop exit
PB: predicated region body
PF: predicated region fallthrough
CT: control target
= control target key end

     0   :  { %v1223_v0 = vmov 2147483648   ;;  %v1224_v1 = vmov 2147483647   ;;  %s1373_s0 = inlined_call_operand.vmem [shape: f32[8,128], index: 0, kind: input, shape index: {}]   ;;  %s1374_s1 = inlined_call_operand.vmem [shape: f32[8,2], index: 1, kind: output, shape index: {0}]   ;;  %s1375_s2 = inlined_call_operand.vmem [shape: s32[8,2], index: 2, kind: output, shape index: {1}]  }
   0x1   :  { %6 = vst [vmem:[#allocation9] sm:$0xff] %v1223_v0  ;;  %7 = vst [vmem:[#allocation11] sm:$0xff] %v1224_v1 }
   0x2   :  { %v47_v2 = vlaneseq  ;;  %v40_v3 = vld [vmem:[%s1373_s0] sm:$0xff]  ;;  %v1225_v4 = vmov 2147483648   ;;  %v1226_v5 = vmov 2147483647   ;;  %s1255_s0 = smov 0  }
   0x3   :  { %76 = vst [vmem:[#allocation10] sm:$0xff] %v1225_v4  ;;  %77 = vst [vmem:[#allocation12] sm:$0xff] %v1226_v5  ;;  %v58_v9 = vsub.s32 2147483647, %v40_v3  ;;  %vm57_vm0 = vcmp.lt.s32.totalorder %v40_v3, 0 }
   0x4   :  { %v1251_v6 = vshrl.u32 %v47_v2, 7  ;;  %v48_v7 = vand.u32 127, %v47_v2 }
   0x5   :  { %v59_v12 = vsel %vm57_vm0, %v58_v9, %v40_v3 }
   0x6   :  { %v51_v8 = vshrl.u32 %v1251_v6, 3 }
   0x8   :  { %v53_v10 = vmul.u32 128, %v51_v8 }
   0xa   :  { %v54_v11 = vadd.s32 %v53_v10, %v48_v7 }
   0xc   :  { %vm61_vm1 = vcmp.lt.s32.totalorder %v54_v11, 128  ;;  %74 = vst [vmem:[#allocation14] sm:$0xff] %v54_v11 }
   0xd   :  { %v62_v13 = vsel %vm61_vm1, %v59_v12, 2147483648 }
   0xe   :  { %63 = vst [vmem:[#allocation13] sm:$0xff] %v62_v13 }
   0xf LB: > { %s365_s11 = scalar_lea.vmem [#allocation10], %s1221_s0  ;;  %s367_s12 = scalar_lea.vmem [#allocation12], %s1221_s0  ;;  %s1221_s0 = sphi %s1255_s0, %s84_s0  }
  0x10   : > { %s84_s0 = sadd.s32 1, %s1221_s0  }
  0x11   : > { %p81_p8 = scmp.ge.s32.totalorder %s84_s0, 2  }
  0x13   : > { %v86_v14 = vld [vmem:[#allocation14] sm:$0xff] }
  0x14   : > { %120 = vxpose.xlu1.b32.start [1/16] %v86_v14, 128 }
  0x15   : > { %v85_v15 = vld [vmem:[#allocation13] sm:$0xff] }
  0x16   : > { %88 = vxpose.xlu0.b32.start [1/16] %v85_v15, 128 }
  0x18   : > { %121 = vxpose.xlu1.b32.cont [2/16] %v86_v14, 128 }
  0x1a   : > { %89 = vxpose.xlu0.b32.cont [2/16] %v85_v15, 128 }
  0x1c   : > { %122 = vxpose.xlu1.b32.cont [3/16] %v86_v14, 128 }
  0x1e   : > { %90 = vxpose.xlu0.b32.cont [3/16] %v85_v15, 128 }
  0x20   : > { %123 = vxpose.xlu1.b32.cont [4/16] %v86_v14, 128 }
  0x22   : > { %91 = vxpose.xlu0.b32.cont [4/16] %v85_v15, 128 }
  0x24   : > { %124 = vxpose.xlu1.b32.cont [5/16] %v86_v14, 128 }
  0x26   : > { %92 = vxpose.xlu0.b32.cont [5/16] %v85_v15, 128 }
  0x28   : > { %125 = vxpose.xlu1.b32.cont [6/16] %v86_v14, 128 }
  0x2a   : > { %93 = vxpose.xlu0.b32.cont [6/16] %v85_v15, 128 }
  0x2c   : > { %126 = vxpose.xlu1.b32.cont [7/16] %v86_v14, 128 }
  0x2e   : > { %94 = vxpose.xlu0.b32.cont [7/16] %v85_v15, 128 }
  0x30   : > { %127 = vxpose.xlu1.b32.cont [8/16] %v86_v14, 128 }
  0x32   : > { %95 = vxpose.xlu0.b32.cont [8/16] %v85_v15, 128 }
  0x34   : > { %128 = vxpose.xlu1.b32.cont [9/16] %v86_v14, 128 }
  0x36   : > { %96 = vxpose.xlu0.b32.cont [9/16] %v85_v15, 128 }
  0x38   : > { %129 = vxpose.xlu1.b32.cont [10/16] %v86_v14, 128 }
  0x3a   : > { %97 = vxpose.xlu0.b32.cont [10/16] %v85_v15, 128 }
  0x3c   : > { %130 = vxpose.xlu1.b32.cont [11/16] %v86_v14, 128 }
  0x3e   : > { %98 = vxpose.xlu0.b32.cont [11/16] %v85_v15, 128 }
  0x40   : > { %131 = vxpose.xlu1.b32.cont [12/16] %v86_v14, 128 }
  0x42   : > { %99 = vxpose.xlu0.b32.cont [12/16] %v85_v15, 128 }
  0x44   : > { %132 = vxpose.xlu1.b32.cont [13/16] %v86_v14, 128 }
  0x46   : > { %100 = vxpose.xlu0.b32.cont [13/16] %v85_v15, 128 }
  0x48   : > { %133 = vxpose.xlu1.b32.cont [14/16] %v86_v14, 128 }
  0x4a   : > { %101 = vxpose.xlu0.b32.cont [14/16] %v85_v15, 128 }
  0x4c   : > { %134 = vxpose.xlu1.b32.cont [15/16] %v86_v14, 128 }
  0x4e   : > { %102 = vxpose.xlu0.b32.cont [15/16] %v85_v15, 128 }
  0x50   : > { %135 = vxpose.xlu1.b32.end [16/16] %v86_v14, 128 }
  0x52   : > { %103 = vxpose.xlu0.b32.end [16/16] %v85_v15, 128 }
  0x90   : > { %v136_v16 = vpop.trf.xlu1 }
  0x92   : > { %v104_v17 = vpop.trf.xlu0 }
  0x94   : > { %v137_v18 = vpop.trf.xlu1 }
  0x95   : > { %vm156_vm2 = vcmp.lt.s32.totalorder %v137_v18, %v136_v16 }
  0x96   : > { %v105_v19 = vpop.trf.xlu0 }
  0x97   : > { %vm154_vm3 = vcmp.gt.s32.totalorder %v105_v19, %v104_v17  ;;  %vm155_vm4 = vcmp.eq.s32.totalorder %v105_v19, %v104_v17 }
  0x98   : > { %vm157_vm5 = vmand %vm155_vm4, %vm156_vm2  ;;  %v138_v21 = vpop.trf.xlu1 }
  0x99   : > { %vm158_vm6 = vmor %vm154_vm3, %vm157_vm5 }
  0x9a   : > { %v159_v20 = vsel %vm158_vm6, %v105_v19, %v104_v17  ;;  %v160_v22 = vsel %vm158_vm6, %v137_v18, %v136_v16  ;;  %v106_v23 = vpop.trf.xlu0 }
  0x9b   : > { %vm165_vm7 = vcmp.lt.s32.totalorder %v138_v21, %v160_v22  ;;  %vm163_vm8 = vcmp.gt.s32.totalorder %v106_v23, %v159_v20  ;;  %vm164_vm9 = vcmp.eq.s32.totalorder %v106_v23, %v159_v20 }
  0x9c   : > { %vm166_vm10 = vmand %vm164_vm9, %vm165_vm7  ;;  %v139_v25 = vpop.trf.xlu1 }
  0x9d   : > { %vm167_vm11 = vmor %vm163_vm8, %vm166_vm10 }
  0x9e   : > { %v168_v24 = vsel %vm167_vm11, %v106_v23, %v159_v20  ;;  %v169_v26 = vsel %vm167_vm11, %v138_v21, %v160_v22  ;;  %v107_v27 = vpop.trf.xlu0 }
  0x9f   : > { %vm174_vm12 = vcmp.lt.s32.totalorder %v139_v25, %v169_v26  ;;  %vm172_vm13 = vcmp.gt.s32.totalorder %v107_v27, %v168_v24  ;;  %vm173_vm14 = vcmp.eq.s32.totalorder %v107_v27, %v168_v24 }
  0xa0   : > { %vm175_vm15 = vmand %vm173_vm14, %vm174_vm12  ;;  %v140_v29 = vpop.trf.xlu1 }
  0xa1   : > { %vm176_vm0 = vmor %vm172_vm13, %vm175_vm15 }
  0xa2   : > { %v177_v28 = vsel %vm176_vm0, %v107_v27, %v168_v24  ;;  %v178_v30 = vsel %vm176_vm0, %v139_v25, %v169_v26  ;;  %v108_v31 = vpop.trf.xlu0 }
  0xa3   : > { %vm183_vm1 = vcmp.lt.s32.totalorder %v140_v29, %v178_v30  ;;  %vm181_vm2 = vcmp.gt.s32.totalorder %v108_v31, %v177_v28  ;;  %vm182_vm3 = vcmp.eq.s32.totalorder %v108_v31, %v177_v28 }
  0xa4   : > { %vm184_vm4 = vmand %vm182_vm3, %vm183_vm1  ;;  %v141_v33 = vpop.trf.xlu1 }
  0xa5   : > { %vm185_vm5 = vmor %vm181_vm2, %vm184_vm4 }
  0xa6   : > { %v186_v32 = vsel %vm185_vm5, %v108_v31, %v177_v28  ;;  %v187_v34 = vsel %vm185_vm5, %v140_v29, %v178_v30  ;;  %v109_v35 = vpop.trf.xlu0 }
  0xa7   : > { %vm192_vm6 = vcmp.lt.s32.totalorder %v141_v33, %v187_v34  ;;  %vm190_vm7 = vcmp.gt.s32.totalorder %v109_v35, %v186_v32  ;;  %vm191_vm8 = vcmp.eq.s32.totalorder %v109_v35, %v186_v32 }
  0xa8   : > { %vm193_vm9 = vmand %vm191_vm8, %vm192_vm6  ;;  %v142_v37 = vpop.trf.xlu1 }
  0xa9   : > { %vm194_vm10 = vmor %vm190_vm7, %vm193_vm9 }
  0xaa   : > { %v195_v36 = vsel %vm194_vm10, %v109_v35, %v186_v32  ;;  %v196_v38 = vsel %vm194_vm10, %v141_v33, %v187_v34  ;;  %v110_v39 = vpop.trf.xlu0 }
  0xab   : > { %vm201_vm11 = vcmp.lt.s32.totalorder %v142_v37, %v196_v38  ;;  %vm199_vm12 = vcmp.gt.s32.totalorder %v110_v39, %v195_v36  ;;  %vm200_vm13 = vcmp.eq.s32.totalorder %v110_v39, %v195_v36 }
  0xac   : > { %vm202_vm14 = vmand %vm200_vm13, %vm201_vm11  ;;  %v143_v41 = vpop.trf.xlu1 }
  0xad   : > { %vm203_vm15 = vmor %vm199_vm12, %vm202_vm14 }
  0xae   : > { %v204_v40 = vsel %vm203_vm15, %v110_v39, %v195_v36  ;;  %v205_v42 = vsel %vm203_vm15, %v142_v37, %v196_v38  ;;  %v111_v43 = vpop.trf.xlu0 }
  0xaf   : > { %vm210_vm0 = vcmp.lt.s32.totalorder %v143_v41, %v205_v42  ;;  %vm208_vm1 = vcmp.gt.s32.totalorder %v111_v43, %v204_v40  ;;  %vm209_vm2 = vcmp.eq.s32.totalorder %v111_v43, %v204_v40 }
  0xb0   : > { %vm211_vm3 = vmand %vm209_vm2, %vm210_vm0  ;;  %v144_v45 = vpop.trf.xlu1 }
  0xb1   : > { %vm212_vm4 = vmor %vm208_vm1, %vm211_vm3 }
  0xb2   : > { %v213_v44 = vsel %vm212_vm4, %v111_v43, %v204_v40  ;;  %v214_v46 = vsel %vm212_vm4, %v143_v41, %v205_v42  ;;  %v112_v47 = vpop.trf.xlu0 }
  0xb3   : > { %vm219_vm5 = vcmp.lt.s32.totalorder %v144_v45, %v214_v46  ;;  %vm217_vm6 = vcmp.gt.s32.totalorder %v112_v47, %v213_v44  ;;  %vm218_vm7 = vcmp.eq.s32.totalorder %v112_v47, %v213_v44 }
  0xb4   : > { %vm220_vm8 = vmand %vm218_vm7, %vm219_vm5  ;;  %v145_v49 = vpop.trf.xlu1 }
  0xb5   : > { %vm221_vm9 = vmor %vm217_vm6, %vm220_vm8 }
  0xb6   : > { %v222_v48 = vsel %vm221_vm9, %v112_v47, %v213_v44  ;;  %v223_v50 = vsel %vm221_vm9, %v144_v45, %v214_v46  ;;  %v113_v51 = vpop.trf.xlu0 }
  0xb7   : > { %vm228_vm10 = vcmp.lt.s32.totalorder %v145_v49, %v223_v50  ;;  %vm226_vm11 = vcmp.gt.s32.totalorder %v113_v51, %v222_v48  ;;  %vm227_vm12 = vcmp.eq.s32.totalorder %v113_v51, %v222_v48 }
  0xb8   : > { %vm229_vm13 = vmand %vm227_vm12, %vm228_vm10  ;;  %v146_v53 = vpop.trf.xlu1 }
  0xb9   : > { %vm230_vm14 = vmor %vm226_vm11, %vm229_vm13 }
  0xba   : > { %v231_v52 = vsel %vm230_vm14, %v113_v51, %v222_v48  ;;  %v232_v54 = vsel %vm230_vm14, %v145_v49, %v223_v50  ;;  %v114_v55 = vpop.trf.xlu0 }
  0xbb   : > { %vm237_vm15 = vcmp.lt.s32.totalorder %v146_v53, %v232_v54  ;;  %vm235_vm0 = vcmp.gt.s32.totalorder %v114_v55, %v231_v52  ;;  %vm236_vm1 = vcmp.eq.s32.totalorder %v114_v55, %v231_v52 }
  0xbc   : > { %vm238_vm2 = vmand %vm236_vm1, %vm237_vm15  ;;  %v147_v57 = vpop.trf.xlu1 }
  0xbd   : > { %vm239_vm3 = vmor %vm235_vm0, %vm238_vm2 }
  0xbe   : > { %v240_v56 = vsel %vm239_vm3, %v114_v55, %v231_v52  ;;  %v241_v58 = vsel %vm239_vm3, %v146_v53, %v232_v54  ;;  %v115_v59 = vpop.trf.xlu0  ;;  %v1227_v53 = vmov 2147483648   ;;  %v1228_v54 = vmov 2147483647  }
  0xbf   : > { %vm246_vm4 = vcmp.lt.s32.totalorder %v147_v57, %v241_v58  ;;  %vm244_vm5 = vcmp.gt.s32.totalorder %v115_v59, %v240_v56  ;;  %vm245_vm6 = vcmp.eq.s32.totalorder %v115_v59, %v240_v56 }
  0xc0   : > { %vm247_vm7 = vmand %vm245_vm6, %vm246_vm4  ;;  %v148_v61 = vpop.trf.xlu1 }
  0xc1   : > { %vm248_vm8 = vmor %vm244_vm5, %vm247_vm7 }
  0xc2   : > { %v249_v60 = vsel %vm248_vm8, %v115_v59, %v240_v56  ;;  %v250_v62 = vsel %vm248_vm8, %v147_v57, %v241_v58  ;;  %v116_v63 = vpop.trf.xlu0 }
  0xc3   : > { %vm255_vm9 = vcmp.lt.s32.totalorder %v148_v61, %v250_v62  ;;  %vm253_vm10 = vcmp.gt.s32.totalorder %v116_v63, %v249_v60  ;;  %vm254_vm11 = vcmp.eq.s32.totalorder %v116_v63, %v249_v60 }
  0xc4   : > { %vm256_vm12 = vmand %vm254_vm11, %vm255_vm9  ;;  %v149_v1 = vpop.trf.xlu1 }
  0xc5   : > { %vm257_vm13 = vmor %vm253_vm10, %vm256_vm12 }
  0xc6   : > { %v258_v0 = vsel %vm257_vm13, %v116_v63, %v249_v60  ;;  %v259_v3 = vsel %vm257_vm13, %v148_v61, %v250_v62  ;;  %v117_v4 = vpop.trf.xlu0 }
  0xc7   : > { %vm264_vm14 = vcmp.lt.s32.totalorder %v149_v1, %v259_v3  ;;  %vm262_vm15 = vcmp.gt.s32.totalorder %v117_v4, %v258_v0  ;;  %vm263_vm0 = vcmp.eq.s32.totalorder %v117_v4, %v258_v0 }
  0xc8   : > { %vm265_vm1 = vmand %vm263_vm0, %vm264_vm14  ;;  %v150_v7 = vpop.trf.xlu1 }
  0xc9   : > { %vm266_vm2 = vmor %vm262_vm15, %vm265_vm1 }
  0xca   : > { %v267_v5 = vsel %vm266_vm2, %v117_v4, %v258_v0  ;;  %v268_v8 = vsel %vm266_vm2, %v149_v1, %v259_v3  ;;  %v118_v9 = vpop.trf.xlu0 }
  0xcb   : > { %vm273_vm3 = vcmp.lt.s32.totalorder %v150_v7, %v268_v8  ;;  %vm271_vm4 = vcmp.gt.s32.totalorder %v118_v9, %v267_v5  ;;  %vm272_vm5 = vcmp.eq.s32.totalorder %v118_v9, %v267_v5 }
  0xcc   : > { %vm274_vm6 = vmand %vm272_vm5, %vm273_vm3  ;;  %v151_v11 = vpop.trf.xlu1 }
  0xcd   : > { %vm275_vm7 = vmor %vm271_vm4, %vm274_vm6 }
  0xce   : > { %v276_v10 = vsel %vm275_vm7, %v118_v9, %v267_v5  ;;  %v277_v12 = vsel %vm275_vm7, %v150_v7, %v268_v8  ;;  %v119_v13 = vpop.trf.xlu0  ;;  %v607_v9 = vld [vmem:[#allocation9] sm:$0xff] (%p81_p8) }
  0xcf   : > { %vm282_vm8 = vcmp.lt.s32.totalorder %v151_v11, %v277_v12  ;;  %vm280_vm9 = vcmp.gt.s32.totalorder %v119_v13, %v276_v10  ;;  %vm281_vm10 = vcmp.eq.s32.totalorder %v119_v13, %v276_v10 }
  0xd0   : > { %vm283_vm11 = vmand %vm281_vm10, %vm282_vm8 }
  0xd1   : > { %vm284_vm12 = vmor %vm280_vm9, %vm283_vm11 }
  0xd2   : > { %v285_v14 = vsel %vm284_vm12, %v119_v13, %v276_v10  ;;  %v286_v15 = vsel %vm284_vm12, %v151_v11, %v277_v12  ;;  %v608_v10 = vld [vmem:[#allocation11] sm:$0xff] (%p81_p8)  ;;  %v1229_v11 = vmov (%p81_p8), 839939668   ;;  %v1230_v13 = vmov (%p81_p8), 1417023538  }
  0xd3   : > { %v288_v16 = vrot.slane %v285_v14, 1  ;;  %v289_v17 = vrot.slane %v286_v15, 1  ;;  %v632_v12 = vunpack.c.l.s4 (%p81_p8), %v1229_v11 }
  0xd5   : > { %vm291_vm13 = vcmp.gt.s32.totalorder %v288_v16, %v285_v14  ;;  %vm292_vm14 = vcmp.eq.s32.totalorder %v288_v16, %v285_v14  ;;  %vm293_vm15 = vcmp.lt.s32.totalorder %v289_v17, %v286_v15 }
  0xd6   : > { %vm294_vm0 = vmand %vm292_vm14, %vm293_vm15 }
  0xd7   : > { %vm295_vm1 = vmor %vm291_vm13, %vm294_vm0 }
  0xd8   : > { %v296_v18 = vsel %vm295_vm1, %v288_v16, %v285_v14  ;;  %v297_v19 = vsel %vm295_vm1, %v289_v17, %v286_v15  ;;  %v660_v14 = vunpack.c.l.s4 (%p81_p8), %v1230_v13  ;;  %v633_v15 = vunpack.c.0.s8 (%p81_p8), %v632_v12 }
  0xd9   : > { %v299_v20 = vrot.slane %v296_v18, 1  ;;  %v300_v21 = vrot.slane %v297_v19, 1 }
  0xdb   : > { %vm302_vm2 = vcmp.gt.s32.totalorder %v299_v20, %v296_v18  ;;  %vm303_vm3 = vcmp.eq.s32.totalorder %v299_v20, %v296_v18  ;;  %vm304_vm4 = vcmp.lt.s32.totalorder %v300_v21, %v297_v19 }
  0xdc   : > { %vm305_vm5 = vmand %vm303_vm3, %vm304_vm4 }
  0xdd   : > { %vm306_vm6 = vmor %vm302_vm2, %vm305_vm5 }
  0xde   : > { %v307_v22 = vsel %vm306_vm6, %v299_v20, %v296_v18  ;;  %v308_v23 = vsel %vm306_vm6, %v300_v21, %v297_v19  ;;  %v653_v19 = vand.u32 (%p81_p8), 4, %v1251_v6  ;;  %v661_v21 = vunpack.c.0.s8 (%p81_p8), %v660_v14 }
  0xdf   : > { %v310_v24 = vrot.slane %v307_v22, 1  ;;  %v311_v25 = vrot.slane %v308_v23, 1 }
  0xe1   : > { %vm315_vm7 = vcmp.lt.s32.totalorder %v311_v25, %v308_v23  ;;  %vm313_vm8 = vcmp.gt.s32.totalorder %v310_v24, %v307_v22  ;;  %vm314_vm9 = vcmp.eq.s32.totalorder %v310_v24, %v307_v22 }
  0xe2   : > { %vm316_vm10 = vmand %vm314_vm9, %vm315_vm7 }
  0xe3   : > { %vm317_vm11 = vmor %vm313_vm8, %vm316_vm10 }
  0xe4   : > { %v318_v26 = vsel %vm317_vm11, %v310_v24, %v307_v22  ;;  %v319_v27 = vsel %vm317_vm11, %v311_v25, %v308_v23 }
  0xe5   : > { %v321_v28 = vrot.slane %v318_v26, 1  ;;  %v322_v29 = vrot.slane %v319_v27, 1 }
  0xe7   : > { %vm324_vm12 = vcmp.gt.s32.totalorder %v321_v28, %v318_v26  ;;  %vm325_vm13 = vcmp.eq.s32.totalorder %v321_v28, %v318_v26  ;;  %vm326_vm14 = vcmp.lt.s32.totalorder %v322_v29, %v319_v27 }
  0xe8   : > { %vm327_vm15 = vmand %vm325_vm13, %vm326_vm14 }
  0xe9   : > { %vm328_vm0 = vmor %vm324_vm12, %vm327_vm15 }
  0xea   : > { %v329_v30 = vsel %vm328_vm0, %v321_v28, %v318_v26  ;;  %v330_v31 = vsel %vm328_vm0, %v322_v29, %v319_v27  ;;  %v1231_v27 = vmov (%p81_p8), 1732584193   ;;  %v1308_v29 = vsub.s32 (%p81_p8), %v661_v21, %v1251_v6 }
  0xeb   : > { %v332_v32 = vrot.slane %v329_v30, 1  ;;  %v333_v33 = vrot.slane %v330_v31, 1  ;;  %v688_v28 = vunpack.c.l.s4 (%p81_p8), %v1231_v27 }
  0xed   : > { %vm335_vm1 = vcmp.gt.s32.totalorder %v332_v32, %v329_v30  ;;  %vm336_vm2 = vcmp.eq.s32.totalorder %v332_v32, %v329_v30  ;;  %vm337_vm3 = vcmp.lt.s32.totalorder %v333_v33, %v330_v31 }
  0xee   : > { %vm338_vm4 = vmand %vm336_vm2, %vm337_vm3 }
  0xef   : > { %vm339_vm5 = vmor %vm335_vm1, %vm338_vm4 }
  0xf0   : > { %v340_v34 = vsel %vm339_vm5, %v332_v32, %v329_v30  ;;  %v341_v35 = vsel %vm339_vm5, %v333_v33, %v330_v31  ;;  %v681_v30 = vand.u32 (%p81_p8), 2, %v1251_v6  ;;  %v689_v33 = vunpack.c.0.s8 (%p81_p8), %v688_v28 }
  0xf1   : > { %v343_v36 = vrot.slane %v340_v34, 1  ;;  %v344_v37 = vrot.slane %v341_v35, 1 }
  0xf3   : > { %vm346_vm6 = vcmp.gt.s32.totalorder %v343_v36, %v340_v34  ;;  %vm347_vm7 = vcmp.eq.s32.totalorder %v343_v36, %v340_v34  ;;  %vm348_vm8 = vcmp.lt.s32.totalorder %v344_v37, %v341_v35 }
  0xf4   : > { %vm349_vm9 = vmand %vm347_vm7, %vm348_vm8 }
  0xf5   : > { %vm350_vm10 = vmor %vm346_vm6, %vm349_vm9 }
  0xf6   : > { %v351_v38 = vsel %vm350_vm10, %v343_v36, %v340_v34  ;;  %v352_v39 = vsel %vm350_vm10, %v344_v37, %v341_v35 }
  0xf7   : > { %v354_v40 = vrot.slane %v351_v38, 1  ;;  %v355_v41 = vrot.slane %v352_v39, 1 }
  0xf9   : > { %vm357_vm11 = vcmp.gt.s32.totalorder %v354_v40, %v351_v38  ;;  %vm358_vm12 = vcmp.eq.s32.totalorder %v354_v40, %v351_v38  ;;  %vm359_vm13 = vcmp.lt.s32.totalorder %v355_v41, %v352_v39 }
  0xfa   : > { %vm360_vm14 = vmand %vm358_vm12, %vm359_vm13  ;;  %vm1302_vm13 = vcmp.ne.s32.totalorder (%p81_p8), %v653_v19, 0 }
  0xfb   : > { %vm361_vm15 = vmor %vm357_vm11, %vm360_vm14 }
  0xfc   : > { %v363_v42 = vsel %vm361_vm15, %v355_v41, %v352_v39  ;;  %v362_v43 = vsel %vm361_vm15, %v354_v40, %v351_v38  ;;  %v1322_v38 = vsub.s32 (%p81_p8), %v689_v33, %v1251_v6 }
  0xfd   : > { %370 = vxpose.xlu0.b32.start.end [1/1] (short) (narrow) %v363_v42, 8  ;;  %366 = vst [vmem:[%s365_s11] sm:$0x1] %v362_v43  ;;  %368 = vst [vmem:[%s367_s12] sm:$0x1] %v363_v42  ;;  %v709_v42 = vand.u32 (%p81_p8), 1, %v1251_v6 }
 0x104   :  { %v595_v7 = vld [vmem:[#allocation10 + $0x7] ss:$-1 sm:$0xff] (%p81_p8)  ;;  %v601_v8 = vld [vmem:[#allocation12 + $0x7] ss:$-1 sm:$0xff] (%p81_p8) }
 0x105   :  { %vm613_vm8 = vcmp.gt.s32.totalorder (%p81_p8), %v607_v9, %v595_v7  ;;  %vm614_vm9 = vcmp.eq.s32.totalorder (%p81_p8), %v607_v9, %v595_v7  ;;  %vm615_vm10 = vcmp.lt.s32.totalorder (%p81_p8), %v608_v10, %v601_v8 }
 0x106   :  { %vm616_vm11 = vmand (%p81_p8), %vm614_vm9, %vm615_vm10  ;;  %vm1315_vm9 = vcmp.ne.s32.totalorder (%p81_p8), %v681_v30, 0 }
 0x107   :  { %vm617_vm12 = vmor (%p81_p8), %vm613_vm8, %vm616_vm11 }
 0x108   :  { %v618_v16 = vsel (%p81_p8), %vm617_vm12, %v607_v9, %v595_v7  ;;  %v620_v17 = vsel (%p81_p8), %vm617_vm12, %v595_v7, %v607_v9  ;;  %v622_v18 = vsel (%p81_p8), %vm617_vm12, %v608_v10, %v601_v8  ;;  %v624_v20 = vsel (%p81_p8), %vm617_vm12, %v601_v8, %v608_v10 }
 0x179   : > { %v386_v44 = vpop.trf.xlu0 }
 0x17a   : > { %v425_v45 = vrot.slane %v386_v44, 1  ;;  %1181 = vpush %v386_v44 }
 0x17c   : > { %1183 = vpush %v425_v45  ;;  %v449_v46 = vrot.slane %v425_v45, 1 }
 0x17e   : > { %1185 = vpush %v449_v46  ;;  %v473_v47 = vrot.slane %v449_v46, 1 }
 0x180   : > { %1187 = vpush %v473_v47  ;;  %v497_v48 = vrot.slane %v473_v47, 1 }
 0x182   : > { %1189 = vpush %v497_v48  ;;  %v521_v49 = vrot.slane %v497_v48, 1 }
 0x184   : > { %1191 = vpush %v521_v49  ;;  %v545_v50 = vrot.slane %v521_v49, 1 }
 0x186   : > { %1193 = vpush %v545_v50  ;;  %v569_v51 = vrot.slane %v545_v50, 1 }
 0x188   : > { %1195 = vpush %v569_v51 }
 0x1ab   : > { %s1182_s13 = spop %1181 }
 0x1ac   : > { %s403_s14 = sshrl.u32 %s1182_s13, 7  ;;  %s405_s15 = ssub.s32 0, %s1182_s13 }
 0x1ad   : > { %s1151_s16 = sshll.u32 %s403_s14, 3  ;;  %p404_p0 = scmp.lt.s32.totalorder %s1182_s13, 0 }
 0x1ae   : > { %s1149_s17 = smin.u32 %s1182_s13, %s405_s15  ;;  %s1184_s20 = spop %1183 }
 0x1af   : > { %s407_s18 = sand.u32 127, %s1149_s17   ;;  %s427_s21 = sshrl.u32 %s1184_s20, 7 }
 0x1b0   : > { %s408_s19 = ssub.s32 0, %s407_s18  ;;  %s429_s25 = ssub.s32 0, %s1184_s20 }
 0x1b1   : > { %s1383_s19 = smov (!%p404_p0, %s408_s19), %s407_s18  ;;  %s1153_s27 = smin.u32 %s1184_s20, %s429_s25 }
 0x1b2   : > { %s410_s22 = sshrl.u32 %s1383_s19, 7  ;;  %s412_s23 = sand.u32 127, %s1383_s19  }
 0x1b3   : > { %s1150_s24 = sshll.u32 %s410_s22, 10  ;;  %p428_p1 = scmp.lt.s32.totalorder %s1184_s20, 0 }
 0x1b4   : > { %s413_s26 = sadd.s32 %s1150_s24, %s412_s23  ;;  %s431_s28 = sand.u32 127, %s1153_s27  }
 0x1b5   : > { %v415_v52 = vstv %s413_s26  ;;  %s432_s29 = ssub.s32 0, %s431_s28  ;;  %s1155_s30 = sshll.u32 %s427_s21, 3 }
 0x1b6   : > { %vm417_vm0 = vcmp.eq.s32.totalorder %v47_v2, %v415_v52  ;;  %s419_s3 = scalar_lea.vmem [#allocation13], %s1151_s16  ;;  %s422_s4 = scalar_lea.vmem [#allocation14], %s1151_s16 }
 0x1b7   : > { %420 = vst.msk [vmem:[%s419_s3] sm:$0xff] %vm417_vm0, %v1227_v53  ;;  %423 = vst.msk [vmem:[%s422_s4] sm:$0xff] %vm417_vm0, %v1228_v54  ;;  %s1385_s29 = smov (!%p428_p1, %s432_s29), %s431_s28  ;;  %s1186_s5 = spop %1185 }
 0x1b8   : > { %s434_s6 = sshrl.u32 %s1385_s29, 7  ;;  %s436_s7 = sand.u32 127, %s1385_s29  }
 0x1b9   : > { %s1154_s8 = sshll.u32 %s434_s6, 10  ;;  %s451_s10 = sshrl.u32 %s1186_s5, 7 }
 0x1ba   : > { %s437_s9 = sadd.s32 %s1154_s8, %s436_s7  ;;  %s453_s11 = ssub.s32 0, %s1186_s5 }
 0x1bb   : > { %v439_v55 = vstv %s437_s9  ;;  %p452_p2 = scmp.lt.s32.totalorder %s1186_s5, 0  ;;  %s1157_s12 = smin.u32 %s1186_s5, %s453_s11 }
 0x1bc   : > { %v440_v56 = vadd.s32 128, %v439_v55  ;;  %s455_s13 = sand.u32 127, %s1157_s12   ;;  %s1159_s14 = sshll.u32 %s451_s10, 3 }
 0x1bd   : > { %s456_s15 = ssub.s32 0, %s455_s13  ;;  %s1188_s16 = spop %1187 }
 0x1be   : > { %vm441_vm1 = vcmp.eq.s32.totalorder %v47_v2, %v440_v56  ;;  %s443_s17 = scalar_lea.vmem [#allocation13], %s1155_s30  ;;  %s446_s18 = scalar_lea.vmem [#allocation14], %s1155_s30 }
 0x1bf   : > { %444 = vst.msk [vmem:[%s443_s17] sm:$0xff] %vm441_vm1, %v1227_v53  ;;  %447 = vst.msk [vmem:[%s446_s18] sm:$0xff] %vm441_vm1, %v1228_v54  ;;  %s1387_s15 = smov (!%p452_p2, %s456_s15), %s455_s13  ;;  %s475_s19 = sshrl.u32 %s1188_s16, 7 }
 0x1c0   : > { %s458_s20 = sshrl.u32 %s1387_s15, 7  ;;  %s460_s21 = sand.u32 127, %s1387_s15  }
 0x1c1   : > { %s1158_s22 = sshll.u32 %s458_s20, 10  ;;  %s477_s23 = ssub.s32 0, %s1188_s16 }
 0x1c2   : > { %s461_s24 = sadd.s32 %s1158_s22, %s460_s21  ;;  %s1161_s25 = smin.u32 %s1188_s16, %s477_s23 }
 0x1c3   : > { %v463_v57 = vstv %s461_s24  ;;  %p476_p3 = scmp.lt.s32.totalorder %s1188_s16, 0  ;;  %s479_s26 = sand.u32 127, %s1161_s25  }
 0x1c4   : > { %v464_v58 = vadd.s32 256, %v463_v57  ;;  %s480_s27 = ssub.s32 0, %s479_s26  ;;  %s1163_s28 = sshll.u32 %s475_s19, 3 }
 0x1c5   : > { %s1389_s27 = smov (!%p476_p3, %s480_s27), %s479_s26  ;;  %s1190_s29 = spop %1189 }
 0x1c6   : > { %vm465_vm2 = vcmp.eq.s32.totalorder %v47_v2, %v464_v58  ;;  %s467_s30 = scalar_lea.vmem [#allocation13], %s1159_s14  ;;  %s470_s3 = scalar_lea.vmem [#allocation14], %s1159_s14 }
 0x1c7   : > { %468 = vst.msk [vmem:[%s467_s30] sm:$0xff] %vm465_vm2, %v1227_v53  ;;  %471 = vst.msk [vmem:[%s470_s3] sm:$0xff] %vm465_vm2, %v1228_v54  ;;  %s482_s4 = sshrl.u32 %s1389_s27, 7  ;;  %s484_s5 = sand.u32 127, %s1389_s27  }
 0x1c8   : > { %s1162_s6 = sshll.u32 %s482_s4, 10  ;;  %s499_s8 = sshrl.u32 %s1190_s29, 7 }
 0x1c9   : > { %s485_s7 = sadd.s32 %s1162_s6, %s484_s5  ;;  %s501_s9 = ssub.s32 0, %s1190_s29 }
 0x1ca   : > { %v487_v59 = vstv %s485_s7  ;;  %p500_p4 = scmp.lt.s32.totalorder %s1190_s29, 0  ;;  %s1165_s10 = smin.u32 %s1190_s29, %s501_s9 }
 0x1cb   : > { %v488_v60 = vadd.s32 384, %v487_v59  ;;  %s503_s11 = sand.u32 127, %s1165_s10   ;;  %s1167_s12 = sshll.u32 %s499_s8, 3 }
 0x1cc   : > { %s504_s13 = ssub.s32 0, %s503_s11  ;;  %s1192_s15 = spop %1191 }
 0x1cd   : > { %vm489_vm3 = vcmp.eq.s32.totalorder %v47_v2, %v488_v60  ;;  %s491_s16 = scalar_lea.vmem [#allocation13], %s1163_s28  ;;  %s494_s14 = scalar_lea.vmem [#allocation14], %s1163_s28 }
 0x1ce   : > { %492 = vst.msk [vmem:[%s491_s16] sm:$0xff] %vm489_vm3, %v1227_v53  ;;  %495 = vst.msk [vmem:[%s494_s14] sm:$0xff] %vm489_vm3, %v1228_v54  ;;  %s1391_s13 = smov (!%p500_p4, %s504_s13), %s503_s11  ;;  %s523_s17 = sshrl.u32 %s1192_s15, 7 }
 0x1cf   : > { %s506_s18 = sshrl.u32 %s1391_s13, 7  ;;  %s508_s19 = sand.u32 127, %s1391_s13  }
 0x1d0   : > { %s1166_s20 = sshll.u32 %s506_s18, 10  ;;  %s525_s21 = ssub.s32 0, %s1192_s15 }
 0x1d1   : > { %s509_s22 = sadd.s32 %s1166_s20, %s508_s19  ;;  %s1169_s23 = smin.u32 %s1192_s15, %s525_s21 }
 0x1d2   : > { %v511_v61 = vstv %s509_s22  ;;  %p524_p5 = scmp.lt.s32.totalorder %s1192_s15, 0  ;;  %s527_s24 = sand.u32 127, %s1169_s23  }
 0x1d3   : > { %v512_v62 = vadd.s32 512, %v511_v61  ;;  %s528_s25 = ssub.s32 0, %s527_s24  ;;  %s1171_s26 = sshll.u32 %s523_s17, 3 }
 0x1d4   : > { %s1393_s25 = smov (!%p524_p5, %s528_s25), %s527_s24  ;;  %s1194_s27 = spop %1193 }
 0x1d5   : > { %vm513_vm4 = vcmp.eq.s32.totalorder %v47_v2, %v512_v62  ;;  %s515_s28 = scalar_lea.vmem [#allocation13], %s1167_s12  ;;  %s518_s29 = scalar_lea.vmem [#allocation14], %s1167_s12 }
 0x1d6   : > { %516 = vst.msk [vmem:[%s515_s28] sm:$0xff] %vm513_vm4, %v1227_v53  ;;  %519 = vst.msk [vmem:[%s518_s29] sm:$0xff] %vm513_vm4, %v1228_v54  ;;  %s530_s30 = sshrl.u32 %s1393_s25, 7  ;;  %s532_s3 = sand.u32 127, %s1393_s25  }
 0x1d7   : > { %s1170_s4 = sshll.u32 %s530_s30, 10  ;;  %s549_s6 = ssub.s32 0, %s1194_s27 }
 0x1d8   : > { %s533_s5 = sadd.s32 %s1170_s4, %s532_s3  ;;  %s547_s7 = sshrl.u32 %s1194_s27, 7 }
 0x1d9   : > { %v535_v63 = vstv %s533_s5  ;;  %s1173_s8 = smin.u32 %s1194_s27, %s549_s6  ;;  %p548_p6 = scmp.lt.s32.totalorder %s1194_s27, 0 }
 0x1da   : > { %v536_v0 = vadd.s32 640, %v535_v63  ;;  %s551_s9 = sand.u32 127, %s1173_s8   ;;  %s1278_s11 = spop %1195 }
 0x1db   : > { %s552_s10 = ssub.s32 0, %s551_s9  ;;  %s539_s12 = scalar_lea.vmem [#allocation13], %s1171_s26 }
 0x1dc   : > { %vm537_vm5 = vcmp.eq.s32.totalorder %v47_v2, %v536_v0  ;;  %s542_s13 = scalar_lea.vmem [#allocation14], %s1171_s26  ;;  %s1395_s10 = smov (!%p548_p6, %s552_s10), %s551_s9 }
 0x1dd   : > { %540 = vst.msk [vmem:[%s539_s12] sm:$0xff] %vm537_vm5, %v1227_v53  ;;  %543 = vst.msk [vmem:[%s542_s13] sm:$0xff] %vm537_vm5, %v1228_v54  ;;  %s1175_s15 = sshll.u32 %s547_s7, 3  ;;  %s554_s16 = sshrl.u32 %s1395_s10, 7 }
 0x1de   : > { %s556_s14 = sand.u32 127, %s1395_s10   ;;  %s1174_s17 = sshll.u32 %s554_s16, 10 }
 0x1df   : > { %s573_s18 = ssub.s32 0, %s1278_s11  ;;  %s557_s19 = sadd.s32 %s1174_s17, %s556_s14 }
 0x1e0   : > { %s1177_s20 = smin.u32 %s1278_s11, %s573_s18  ;;  %v559_v1 = vstv %s557_s19  ;;  %p572_p7 = scmp.lt.s32.totalorder %s1278_s11, 0 }
 0x1e1   : > { %s575_s21 = sand.u32 127, %s1177_s20   ;;  %v560_v3 = vadd.s32 768, %v559_v1  ;;  %s571_s23 = sshrl.u32 %s1278_s11, 7 }
 0x1e2   : > { %s576_s22 = ssub.s32 0, %s575_s21  ;;  %s563_s24 = scalar_lea.vmem [#allocation13], %s1175_s15 }
 0x1e3   : > { %s1397_s22 = smov (!%p572_p7, %s576_s22), %s575_s21  ;;  %vm561_vm6 = vcmp.eq.s32.totalorder %v47_v2, %v560_v3  ;;  %s566_s25 = scalar_lea.vmem [#allocation14], %s1175_s15 }
 0x1e4   : > { %564 = vst.msk [vmem:[%s563_s24] sm:$0xff] %vm561_vm6, %v1227_v53  ;;  %567 = vst.msk [vmem:[%s566_s25] sm:$0xff] %vm561_vm6, %v1228_v54  ;;  %s578_s26 = sshrl.u32 %s1397_s22, 7  ;;  %s580_s27 = sand.u32 127, %s1397_s22  }
 0x1e5   : > { %s1178_s28 = sshll.u32 %s578_s26, 10  ;;  %s1179_s30 = sshll.u32 %s571_s23, 3 }
 0x1e6   : > { %s581_s29 = sadd.s32 %s1178_s28, %s580_s27  ;;  %s587_s3 = scalar_lea.vmem [#allocation13], %s1179_s30 }
 0x1e7   : > { %v583_v4 = vstv %s581_s29  ;;  %s590_s4 = scalar_lea.vmem [#allocation14], %s1179_s30  ;;  %83 = sbr.rel (!%p81_p8) target bundleno = 15 (0xf), region = 163 }
 0x1e8   : > { %v584_v5 = vadd.s32 896, %v583_v4 }
 0x1ea   : > { %vm585_vm7 = vcmp.eq.s32.totalorder %v47_v2, %v584_v5  ;;  %v1297_v2 = vsub.s32 (%p81_p8), %v633_v15, %v1251_v6 }
 0x1eb   : > { %588 = vst.msk [vmem:[%s587_s3] sm:$0xff] %vm585_vm7, %v1227_v53  ;;  %591 = vst.msk [vmem:[%s590_s4] sm:$0xff] %vm585_vm7, %v1228_v54 }
 0x1ec   :  { %v637_v22 = vrot.slane %v618_v16, %v1297_v2  ;;  %v644_v23 = vrot.slane %v622_v18, %v1297_v2  ;;  %v818_v24 = vrot.slane %v620_v17, %v1297_v2  ;;  %v825_v26 = vrot.slane %v624_v20, %v1297_v2 }
 0x1ee   :  { %vm646_vm14 = vcmp.gt.s32.totalorder %v618_v16, %v637_v22  ;;  %vm647_vm15 = vcmp.eq.s32.totalorder %v618_v16, %v637_v22  ;;  %vm648_vm0 = vcmp.lt.s32.totalorder %v622_v18, %v644_v23  ;;  %vm828_vm2 = vcmp.eq.s32.totalorder %v620_v17, %v818_v24 }
 0x1ef   :  { %vm649_vm1 = vmand %vm647_vm15, %vm648_vm0  ;;  %vm829_vm3 = vcmp.lt.s32.totalorder %v624_v20, %v825_v26  ;;  %vm827_vm5 = vcmp.gt.s32.totalorder %v620_v17, %v818_v24 }
 0x1f0   :  { %vm650_vm4 = vmor %vm646_vm14, %vm649_vm1 }
 0x1f1   :  { %vm655_vm6 = vmxor %vm650_vm4, %vm1302_vm13 }
 0x1f2   :  { %v656_v31 = vsel %vm655_vm6, %v618_v16, %v637_v22  ;;  %v657_v32 = vsel %vm655_vm6, %v622_v18, %v644_v23  ;;  %vm830_vm7 = vmand %vm828_vm2, %vm829_vm3 }
 0x1f3   :  { %v665_v34 = vrot.slane %v656_v31, %v1308_v29  ;;  %v672_v35 = vrot.slane %v657_v32, %v1308_v29  ;;  %vm831_vm8 = vmor %vm827_vm5, %vm830_vm7 }
 0x1f4   :  { %vm836_vm10 = vmxor %vm831_vm8, %vm1302_vm13 }
 0x1f5   :  { %vm674_vm11 = vcmp.gt.s32.totalorder %v656_v31, %v665_v34  ;;  %vm675_vm12 = vcmp.eq.s32.totalorder %v656_v31, %v665_v34  ;;  %vm676_vm14 = vcmp.lt.s32.totalorder %v657_v32, %v672_v35  ;;  %v837_v37 = vsel %vm836_vm10, %v620_v17, %v818_v24 }
 0x1f6   :  { %vm677_vm15 = vmand %vm675_vm12, %vm676_vm14  ;;  %v838_v39 = vsel %vm836_vm10, %v624_v20, %v825_v26  ;;  %v846_v40 = vrot.slane %v837_v37, %v1308_v29 }
 0x1f7   :  { %vm678_vm0 = vmor %vm674_vm11, %vm677_vm15  ;;  %v853_v41 = vrot.slane %v838_v39, %v1308_v29  ;;  %vm1331_vm11 = vcmp.ne.s32.totalorder %v709_v42, 0 }
 0x1f8   :  { %vm683_vm1 = vmxor %vm678_vm0, %vm1315_vm9  ;;  %vm855_vm2 = vcmp.gt.s32.totalorder %v837_v37, %v846_v40  ;;  %vm856_vm3 = vcmp.eq.s32.totalorder %v837_v37, %v846_v40 }
 0x1f9   :  { %v684_v43 = vsel %vm683_vm1, %v656_v31, %v665_v34  ;;  %v685_v44 = vsel %vm683_vm1, %v657_v32, %v672_v35  ;;  %vm857_vm4 = vcmp.lt.s32.totalorder %v838_v39, %v853_v41 }
 0x1fa   :  { %v693_v45 = vrot.slane %v684_v43, %v1322_v38  ;;  %v700_v46 = vrot.slane %v685_v44, %v1322_v38  ;;  %vm858_vm5 = vmand %vm856_vm3, %vm857_vm4 }
 0x1fb   :  { %vm859_vm6 = vmor %vm855_vm2, %vm858_vm5 }
 0x1fc   :  { %vm702_vm7 = vcmp.gt.s32.totalorder %v684_v43, %v693_v45  ;;  %vm703_vm8 = vcmp.eq.s32.totalorder %v684_v43, %v693_v45  ;;  %vm704_vm10 = vcmp.lt.s32.totalorder %v685_v44, %v700_v46  ;;  %vm864_vm12 = vmxor %vm859_vm6, %vm1315_vm9 }
 0x1fd   :  { %vm705_vm14 = vmand %vm703_vm8, %vm704_vm10  ;;  %v865_v6 = vsel %vm864_vm12, %v837_v37, %v846_v40  ;;  %v866_v48 = vsel %vm864_vm12, %v838_v39, %v853_v41 }
 0x1fe   :  { %vm706_vm15 = vmor %vm702_vm7, %vm705_vm14  ;;  %v874_v49 = vrot.slane %v865_v6, %v1322_v38  ;;  %v881_v50 = vrot.slane %v866_v48, %v1322_v38 }
 0x1ff   :  { %vm711_vm0 = vmxor %vm706_vm15, %vm1331_vm11 }
 0x200   :  { %v712_v51 = vsel %vm711_vm0, %v684_v43, %v693_v45  ;;  %v713_v52 = vsel %vm711_vm0, %v685_v44, %v700_v46  ;;  %vm883_vm1 = vcmp.gt.s32.totalorder %v865_v6, %v874_v49  ;;  %vm884_vm2 = vcmp.eq.s32.totalorder %v865_v6, %v874_v49 }
 0x201   :  { %v727_v53 = vrot.slane %v712_v51, %v1297_v2  ;;  %v734_v54 = vrot.slane %v713_v52, %v1297_v2  ;;  %vm885_vm3 = vcmp.lt.s32.totalorder %v866_v48, %v881_v50 }
 0x202   :  { %vm886_vm4 = vmand %vm884_vm2, %vm885_vm3 }
 0x203   :  { %vm736_vm5 = vcmp.gt.s32.totalorder %v712_v51, %v727_v53  ;;  %vm737_vm6 = vcmp.eq.s32.totalorder %v712_v51, %v727_v53  ;;  %vm738_vm7 = vcmp.lt.s32.totalorder %v713_v52, %v734_v54  ;;  %vm887_vm8 = vmor %vm883_vm1, %vm886_vm4 }
 0x204   :  { %vm739_vm10 = vmand %vm737_vm6, %vm738_vm7 }
 0x205   :  { %vm740_vm12 = vmor %vm736_vm5, %vm739_vm10 }
 0x206   :  { %vm745_vm14 = vmxor %vm740_vm12, %vm1302_vm13 }
 0x207   :  { %v746_v55 = vsel %vm745_vm14, %v712_v51, %v727_v53  ;;  %v747_v56 = vsel %vm745_vm14, %v713_v52, %v734_v54  ;;  %vm892_vm15 = vmxor %vm887_vm8, %vm1331_vm11 }
 0x208   :  { %v755_v57 = vrot.slane %v746_v55, %v1308_v29  ;;  %v762_v58 = vrot.slane %v747_v56, %v1308_v29  ;;  %v893_v59 = vsel %vm892_vm15, %v865_v6, %v874_v49  ;;  %v894_v60 = vsel %vm892_vm15, %v866_v48, %v881_v50 }
 0x209   :  { %v908_v61 = vrot.slane %v893_v59, %v1297_v2  ;;  %v915_v62 = vrot.slane %v894_v60, %v1297_v2 }
 0x20a   :  { %vm764_vm0 = vcmp.gt.s32.totalorder %v746_v55, %v755_v57  ;;  %vm765_vm1 = vcmp.eq.s32.totalorder %v746_v55, %v755_v57  ;;  %vm766_vm2 = vcmp.lt.s32.totalorder %v747_v56, %v762_v58 }
 0x20b   :  { %vm767_vm3 = vmand %vm765_vm1, %vm766_vm2  ;;  %vm918_vm4 = vcmp.eq.s32.totalorder %v893_v59, %v908_v61  ;;  %vm919_vm5 = vcmp.lt.s32.totalorder %v894_v60, %v915_v62  ;;  %vm917_vm7 = vcmp.gt.s32.totalorder %v893_v59, %v908_v61 }
 0x20c   :  { %vm768_vm6 = vmor %vm764_vm0, %vm767_vm3 }
 0x20d   :  { %vm773_vm8 = vmxor %vm768_vm6, %vm1315_vm9 }
 0x20e   :  { %v774_v63 = vsel %vm773_vm8, %v746_v55, %v755_v57  ;;  %v775_v0 = vsel %vm773_vm8, %v747_v56, %v762_v58  ;;  %vm920_vm10 = vmand %vm918_vm4, %vm919_vm5 }
 0x20f   :  { %v783_v1 = vrot.slane %v774_v63, %v1322_v38  ;;  %v790_v3 = vrot.slane %v775_v0, %v1322_v38  ;;  %vm921_vm12 = vmor %vm917_vm7, %vm920_vm10 }
 0x210   :  { %vm926_vm14 = vmxor %vm921_vm12, %vm1302_vm13 }
 0x211   :  { %vm792_vm15 = vcmp.gt.s32.totalorder %v774_v63, %v783_v1  ;;  %vm793_vm1 = vcmp.eq.s32.totalorder %v774_v63, %v783_v1  ;;  %vm794_vm2 = vcmp.lt.s32.totalorder %v775_v0, %v790_v3  ;;  %v927_v4 = vsel %vm926_vm14, %v893_v59, %v908_v61 }
 0x212   :  { %vm795_vm0 = vmand %vm793_vm1, %vm794_vm2  ;;  %v928_v5 = vsel %vm926_vm14, %v894_v60, %v915_v62  ;;  %v936_v7 = vrot.slane %v927_v4, %v1308_v29 }
 0x213   :  { %vm796_vm3 = vmor %vm792_vm15, %vm795_vm0  ;;  %v943_v8 = vrot.slane %v928_v5, %v1308_v29 }
 0x214   :  { %vm801_vm4 = vmxor %vm796_vm3, %vm1331_vm11  ;;  %vm945_vm5 = vcmp.gt.s32.totalorder %v927_v4, %v936_v7  ;;  %vm946_vm6 = vcmp.eq.s32.totalorder %v927_v4, %v936_v7 }
 0x215   :  { %v802_v9 = vsel %vm801_vm4, %v774_v63, %v783_v1  ;;  %v803_v10 = vsel %vm801_vm4, %v775_v0, %v790_v3  ;;  %vm947_vm7 = vcmp.lt.s32.totalorder %v928_v5, %v943_v8 }
 0x216   :  { %805 = vst [vmem:[#allocation9] sm:$0xff] %v802_v9  ;;  %806 = vst [vmem:[#allocation11] sm:$0xff] %v803_v10 }
 0x217   :  { %vm948_vm13 = vmand %vm946_vm6, %vm947_vm7 }
 0x218   :  { %vm949_vm8 = vmor %vm945_vm5, %vm948_vm13 }
 0x219   :  { %vm954_vm10 = vmxor %vm949_vm8, %vm1315_vm9 }
 0x21a   :  { %v955_v11 = vsel %vm954_vm10, %v927_v4, %v936_v7  ;;  %v956_v12 = vsel %vm954_vm10, %v928_v5, %v943_v8 }
 0x21b   :  { %v964_v13 = vrot.slane %v955_v11, %v1322_v38  ;;  %v971_v14 = vrot.slane %v956_v12, %v1322_v38 }
 0x21d   :  { %vm973_vm12 = vcmp.gt.s32.totalorder %v955_v11, %v964_v13  ;;  %vm974_vm14 = vcmp.eq.s32.totalorder %v955_v11, %v964_v13  ;;  %vm975_vm15 = vcmp.lt.s32.totalorder %v956_v12, %v971_v14  ;;  %v989_v17 = vld [vmem:[#allocation9] sm:$0xff]  ;;  %v1013_v20 = vld [vmem:[#allocation11] sm:$0xff] }
 0x21e   :  { %vm976_vm1 = vmand %vm974_vm14, %vm975_vm15  ;;  %vm990_vm9 = vcmp.lt.s32.totalorder %v989_v17, 0  ;;  %v991_v18 = vsub.s32 2147483647, %v989_v17 }
 0x21f   :  { %vm977_vm2 = vmor %vm973_vm12, %vm976_vm1 }
 0x220   :  { %vm982_vm0 = vmxor %vm977_vm2, %vm1331_vm11  ;;  %v992_v19 = vsel %vm990_vm9, %v991_v18, %v989_v17 }
 0x221   :  { %v983_v15 = vsel %vm982_vm0, %v955_v11, %v964_v13  ;;  %v984_v16 = vsel %vm982_vm0, %v956_v12, %v971_v14  ;;  %993 = vst [vmem:[#allocation9] sm:$0xff] %v992_v19  ;;  %995 = vxpose.xlu0.b32.start.end [1/1] (short) (narrow) %v992_v19, 8 }
 0x222   :  { %986 = vst [vmem:[#allocation10] sm:$0xff] %v983_v15  ;;  %987 = vst [vmem:[#allocation12] sm:$0xff] %v984_v16 }
 0x225   :  { %1014 = vxpose.xlu0.b32.start.end [1/1] (short) (narrow) %v1013_v20, 8 }
 0x29d   :  { %v996_v2 = vpop.trf.xlu0 }
 0x29e   :  { %1061 = vst [vmem:[%s1374_s1] sm:$0xff] %v996_v2 }
 0x2a1   :  { %v1015_v21 = vpop.trf.xlu0 }
 0x2a2   :  { %1094 = vst [vmem:[%s1375_s2] sm:$0xff] %v1015_v21 }

// kernel: _query.1
= control target key start
LH: loop header
LB: loop body
LE: loop exit
PB: predicated region body
PF: predicated region fallthrough
CT: control target
= control target key end

     0   :  { %v194_v0 = vmov 0   ;;  %v195_v2 = vmov 0.0   ;;  %vm196_vm0 = vmmov 0   ;;  %v13_v4 = vlaneseq  ;;  %s222_s0 = inlined_call_operand.vmem [shape: s32[8,1], index: 0, kind: input, shape index: {}]   ;;  %s223_s1 = inlined_call_operand.vmem [shape: f32[8,128], index: 1, kind: input, shape index: {}]   ;;  %s224_s2 = inlined_call_operand.vmem [shape: f32[8,128], index: 2, kind: output, shape index: {}]  }
   0x1   :  { %193 = vset.pattern.permute.xlu0 %v194_v0  ;;  %v12_v1 = vld [vmem:[%s222_s0] sm:$0xff]  ;;  %179 = vmatprep.subr.mxu0 %v195_v2  ;;  %v197_v7 = vmov 1.0   ;;  %vm91_vm2 = vcmask 64512  }
   0x2   :  { %v11_v3 = vld [vmem:[%s223_s1] sm:$0xff]  ;;  %16 = vperm.xlu0 %193, %v12_v1   ;;  %181 = vmatprep.mubr.msk.f32.mxu0 %vm196_vm0, %v195_v2  ;;  %v14_v5 = vand.u32 127, %v13_v4 }
   0x3   :  { %180 = vmatpush3.xpose.msra.mxu0 %v11_v3  ;;  %184 = vmatprep.subr.mxu1 %v195_v2 }
   0x4   :  { %185 = vmatpush3.msra.mxu1 %v11_v3  ;;  %186 = vmatprep.mubr.msk.f32.mxu1 %vm196_vm0, %v195_v2  ;;  %vm165_vm3 = vcmp.ge.s32.totalorder %v14_v5, 2 }
  0x7d   :  { %v17_v6 = vpop.permute.xlu0 %16 }
  0x7e   :  { %vm18_vm1 = vcmp.eq.s32.totalorder %v14_v5, %v17_v6 }
  0x7f   :  { %182 = vmatmul.mubr.msk.f32.vlgmr.msra.gmra.mxu0 %vm18_vm1, %v197_v7 }
 0x13f   :  { %v87_v8 = vpop.f32.mrf.mxu0 }
 0x140   :  { %187 = vmatmul.mubr.msk.f32.vlgmr.msra.gmra.mxu1 %vm91_vm2, %v87_v8 }
 0x141   :  { %v183_v9 = vpop.f32.mrf.mxu0 }
 0x200   :  { %v161_v10 = vpop.f32.mrf.mxu1 }
 0x201   :  { %v166_v11 = vsel %vm165_vm3, -inf, %v161_v10 }
 0x202   :  { %167 = vst [vmem:[%s224_s2] sm:$0xff] %v166_v11  ;;  %v188_v12 = vpop.f32.mrf.mxu1 }

</bundles_post_ra>
